<compile_context>
chip_gen: v7x
topology: tpu7x:2x2x1
jax: 0.10.0
libtpu: 0.0.40
codegen_flags: <defaults>
</compile_context>

<pallas_src>
import functools

import jax
import jax.numpy as jnp
from jax.experimental import pallas as pl
from jax.experimental.pallas import tpu as pltpu


def _round_up(x, m):
    return (x + m - 1) // m * m


def autospec_kernel(
    x_ref,                       # (TB, C, THW)  image tile
    wb_ref, bb_ref,              # stem:        (C, FP),  (1, FP)
    wh_ref, bh_ref,              # fused heads: (FP, HP), (1, HP)
    wc_ref, bc_ref,              # class head:  (HP, NCP),(1, NCP)
    head_ref, cls_ref,           # outputs:     (TB, HP), (TB, NCP)
    acc_ref,                     # scratch:     (TB, C) f32 GAP accumulator
    *, inv_hw,
):
    s = pl.program_id(1)

    @pl.when(s == 0)
    def _():
        acc_ref[...] = jnp.zeros_like(acc_ref)

    # Partial global-average-pool: accumulate this HW tile's sum in f32.
    acc_ref[...] += jnp.sum(x_ref[...], axis=-1)

    @pl.when(s == pl.num_programs(1) - 1)
    def _():
        feat0 = acc_ref[...] * inv_hw                           # (TB, C)
        # Synthetic base stem projection (output lane-padded to 128).
        feat = jnp.dot(feat0, wb_ref[...],
                       preferred_element_type=jnp.float32) + bb_ref[...]
        # Fused attribute heads + identity passthrough of feat:
        #   head = [feat | year | make | type | 0-pad]  (lane-dense slab)
        head = jnp.dot(feat, wh_ref[...],
                       preferred_element_type=jnp.float32) + bh_ref[...]
        # Class head applied to ReLU of the (implicitly concatenated) slab.
        cls = jnp.dot(jnp.maximum(head, 0.0), wc_ref[...],
                      preferred_element_type=jnp.float32) + bc_ref[...]
        head_ref[...] = head.astype(head_ref.dtype)
        cls_ref[...] = cls.astype(cls_ref.dtype)


def _pick_tiles(B, C, HW, x_block_budget_bytes=4 << 20):
    # Batch tile: a divisor of B that is a multiple of 8, else the full batch
    # (the block sublane constraint needs %8 == 0 or the full extent).
    TB = B
    for t in (128, 64, 32, 16, 8):
        if B % t == 0:
            TB = t
            break
    # HW tile: a multiple-of-128 divisor of HW within the per-block byte
    # budget (the pipeline double-buffers it), else the full extent.
    if HW % 128 == 0:
        THW = 128
        for t in (4096, 2048, 1024, 512, 256, 128):
            if HW % t == 0 and TB * C * t * 4 <= x_block_budget_bytes:
                THW = t
                break
        # If even a 128-wide HW tile blows the budget, shrink the batch tile.
        while TB % 16 == 0 and TB * C * THW * 4 > x_block_budget_bytes:
            TB //= 2
    else:
        THW = HW
    return TB, THW


def autospec_forward(x, params, *, hw_tile=None, batch_tile=None):
    """x: (B, C, H, W) float32 NCHW image.  Returns (cls, year, make, typ)."""
    (wb, bb, wy, by, wm, bm, wt, bt, wc, bc) = params
    B, C, H, W = x.shape
    HW = H * W
    F = wb.shape[1]
    NY, NM, NT = wy.shape[1], wm.shape[1], wt.shape[1]
    NC = wc.shape[1]
    NA = F + NY + NM + NT

    # Lane-pad every feature dim to a multiple of 128 (full vregs, unmasked vst).
    FP = _round_up(F, 128)
    HP = _round_up(NA, 128)
    NCP = _round_up(NC, 128)

    f32 = jnp.float32
    x3 = x.reshape(B, C, HW).astype(f32)

    # ---- wrapper-side weight fusion & 128-lane padding (pure layout prep) ----
    wb_p = jnp.zeros((C, FP), f32).at[:, :F].set(wb.astype(f32))
    bb_p = jnp.zeros((1, FP), f32).at[:, :F].set(bb.astype(f32).reshape(1, F))
    # Fused head weight: identity passthrough of feat + the three attribute heads.
    wh = jnp.zeros((FP, HP), f32)
    wh = wh.at[:F, :F].set(jnp.eye(F, dtype=f32))
    wh = wh.at[:F, F:F + NY].set(wy.astype(f32))
    wh = wh.at[:F, F + NY:F + NY + NM].set(wm.astype(f32))
    wh = wh.at[:F, F + NY + NM:NA].set(wt.astype(f32))
    bh = jnp.zeros((1, HP), f32)
    bh = bh.at[:, F:F + NY].set(by.astype(f32).reshape(1, NY))
    bh = bh.at[:, F + NY:F + NY + NM].set(bm.astype(f32).reshape(1, NM))
    bh = bh.at[:, F + NY + NM:NA].set(bt.astype(f32).reshape(1, NT))
    # Class head: K padded to the head-slab width, N padded to 128.
    wc_p = jnp.zeros((HP, NCP), f32).at[:NA, :NC].set(wc.astype(f32))
    bc_p = jnp.zeros((1, NCP), f32).at[:, :NC].set(bc.astype(f32).reshape(1, NC))

    # ---- tiling ----
    TB, THW = _pick_tiles(B, C, HW)
    if batch_tile is not None:
        TB = batch_tile
    if hw_tile is not None:
        THW = hw_tile
    assert B % TB == 0 and HW % THW == 0, (B, TB, HW, THW)
    grid = (B // TB, HW // THW)

    # VMEM budget: double-buffered x tile + resident weights/outputs + scratch.
    est_bytes = 4 * (2 * TB * C * THW
                     + C * FP + FP * HP + HP * NCP + FP + HP + NCP
                     + 2 * TB * (HP + NCP)
                     + TB * C)
    vmem_limit = int(min(max(2 * est_bytes, 16 << 20), 32 << 20))

    kernel = functools.partial(autospec_kernel, inv_hw=1.0 / float(HW))

    head_out, cls_out = pl.pallas_call(
        kernel,
        out_shape=(
            jax.ShapeDtypeStruct((B, HP), f32),
            jax.ShapeDtypeStruct((B, NCP), f32),
        ),
        grid_spec=pltpu.PrefetchScalarGridSpec(
            num_scalar_prefetch=0,
            grid=grid,
            in_specs=[
                # Image: pipelined (batch tile, full C, HW tile).
                pl.BlockSpec((TB, C, THW), lambda b, s: (b, 0, s)),
                # Weights/biases are tiny: full-array blocks with a constant
                # index map -> DMA'd into VMEM once and reused every step.
                pl.BlockSpec((C, FP), lambda b, s: (0, 0)),
                pl.BlockSpec((1, FP), lambda b, s: (0, 0)),
                pl.BlockSpec((FP, HP), lambda b, s: (0, 0)),
                pl.BlockSpec((1, HP), lambda b, s: (0, 0)),
                pl.BlockSpec((HP, NCP), lambda b, s: (0, 0)),
                pl.BlockSpec((1, NCP), lambda b, s: (0, 0)),
            ],
            out_specs=(
                # Output blocks are revisited across the HW reduction axis and
                # only written on its last step (accumulator pattern).
                pl.BlockSpec((TB, HP), lambda b, s: (b, 0)),
                pl.BlockSpec((TB, NCP), lambda b, s: (b, 0)),
            ),
            scratch_shapes=[pltpu.VMEM((TB, C), jnp.float32)],
        ),
        compiler_params=pltpu.CompilerParams(
            dimension_semantics=("parallel", "arbitrary"),
            vmem_limit_bytes=vmem_limit,
        ),
    )(x3, wb_p, bb_p, wh, bh, wc_p, bc_p)

    cls = cls_out[:, :NC]
    year = head_out[:, F:F + NY]
    make = head_out[:, F + NY:F + NY + NM]
    typ = head_out[:, F + NY + NM:NA]
    return cls, year, make, typ


def init_params(key, C, in_features, num_classes, num_years, num_makes, num_types):
    """Deterministic PyTorch-Linear-style init; weights stored as [in, out]."""
    def linear(key, fan_in, fan_out):
        kw, kb = jax.random.split(key)
        bound = 1.0 / jnp.sqrt(jnp.float32(fan_in))
        w = jax.random.uniform(kw, (fan_in, fan_out), jnp.float32, -bound, bound)
        b = jax.random.uniform(kb, (1, fan_out), jnp.float32, -bound, bound)
        return w, b

    keys = jax.random.split(key, 5)
    wb, bb = linear(keys[0], C, in_features)              # synthetic base stem
    wy, by = linear(keys[1], in_features, num_years)
    wm, bm = linear(keys[2], in_features, num_makes)
    wt, bt = linear(keys[3], in_features, num_types)
    cat_dim = in_features + num_years + num_makes + num_types
    wc, bc = linear(keys[4], cat_dim, num_classes)
    return (wb, bb, wy, by, wm, bm, wt, bt, wc, bc)


def reference_forward(x, params):
    """Plain-JAX reference mirroring the PyTorch forward (eval mode)."""
    (wb, bb, wy, by, wm, bm, wt, bt, wc, bc) = params
    B, C, H, W = x.shape
    feat = jnp.mean(x.reshape(B, C, H * W), axis=-1) @ wb + bb
    year = feat @ wy + by
    make = feat @ wm + bm
    typ = feat @ wt + bt
    cat = jnp.concatenate([feat, year, make, typ], axis=1)
    cls = jnp.maximum(cat, 0.0) @ wc + bc
    return cls, year, make, typ


if __name__ == "__main__":
    # Small shapes consistent with the module's forward.
    B, C, H, W = 2, 4, 16, 16
    in_features, num_classes, num_years, num_makes, num_types = 32, 10, 16, 12, 8

    key = jax.random.PRNGKey(0)
    kx, kp = jax.random.split(key)
    x = jax.random.normal(kx, (B, C, H, W), jnp.float32)
    params = init_params(kp, C, in_features, num_classes,
                         num_years, num_makes, num_types)

    # hw_tile=128 -> 2-step HW reduction so the pipelined accumulator path is
    # exercised even at this tiny spatial size.
    outs = jax.block_until_ready(autospec_forward(x, params, hw_tile=128))
    refs = reference_forward(x, params)
    for o, r in zip(outs, refs):
        assert o.shape == r.shape, (o.shape, r.shape)
        assert jnp.allclose(o, r, atol=1e-4, rtol=1e-4), float(jnp.max(jnp.abs(o - r)))

    print("KERNEL_OK")
</pallas_src>

<mosaic_0001>
module attributes {stable_mosaic.version = 11 : i64} {
  func.func @autospec_kernel(%arg0: i32, %arg1: i32, %arg2: memref<2x4x128xf32, #tpu.memory_space<vmem>>, %arg3: memref<4x128xf32, #tpu.memory_space<vmem>>, %arg4: memref<1x128xf32, #tpu.memory_space<vmem>>, %arg5: memref<128x128xf32, #tpu.memory_space<vmem>>, %arg6: memref<1x128xf32, #tpu.memory_space<vmem>>, %arg7: memref<128x128xf32, #tpu.memory_space<vmem>>, %arg8: memref<1x128xf32, #tpu.memory_space<vmem>>, %arg9: memref<2x128xf32, #tpu.memory_space<vmem>>, %arg10: memref<2x128xf32, #tpu.memory_space<vmem>>, %arg11: memref<2x4xf32, #tpu.memory_space<vmem>>) attributes {dimension_semantics = [#tpu.dimension_semantics<parallel>, #tpu.dimension_semantics<arbitrary>], iteration_bounds = array<i64: 1, 2>, scalar_prefetch = 0 : i64, scratch_operands = 1 : i64, tpu.core_type = #tpu.core_type<tc>, window_params = [{transform_indices = @transform_0, window_bounds = array<i64: 2, 4, 128>}, {pipeline_mode = #tpu.pipeline_mode<synchronous>, transform_indices = @transform_1, window_bounds = array<i64: 4, 128>}, {pipeline_mode = #tpu.pipeline_mode<synchronous>, transform_indices = @transform_2, window_bounds = array<i64: 1, 128>}, {pipeline_mode = #tpu.pipeline_mode<synchronous>, transform_indices = @transform_3, window_bounds = array<i64: 128, 128>}, {pipeline_mode = #tpu.pipeline_mode<synchronous>, transform_indices = @transform_4, window_bounds = array<i64: 1, 128>}, {pipeline_mode = #tpu.pipeline_mode<synchronous>, transform_indices = @transform_5, window_bounds = array<i64: 128, 128>}, {pipeline_mode = #tpu.pipeline_mode<synchronous>, transform_indices = @transform_6, window_bounds = array<i64: 1, 128>}, {transform_indices = @transform_7, window_bounds = array<i64: 2, 128>}, {transform_indices = @transform_8, window_bounds = array<i64: 2, 128>}]} {
    %c0_i32 = arith.constant 0 : i32
    %0 = arith.cmpi eq, %arg1, %c0_i32 : i32
    %1 = arith.extui %0 : i1 to i32
    %c0_i32_0 = arith.constant 0 : i32
    %2 = arith.cmpi ne, %1, %c0_i32_0 : i32
    scf.if %2 {
      %cst_8 = arith.constant 0.000000e+00 : f32
      %11 = vector.broadcast %cst_8 : f32 to vector<2x4xf32>
      %c0_9 = arith.constant 0 : index
      %c0_10 = arith.constant 0 : index
      %12 = vector.load %arg11[%c0_9, %c0_10] : memref<2x4xf32, #tpu.memory_space<vmem>>, vector<2x4xf32>
      tpu.vector_store %arg11[%c0_9, %c0_10], %11 {strides = array<i32>} : memref<2x4xf32, #tpu.memory_space<vmem>>, vector<2x4xf32>,
    } else {
    }
    %c0 = arith.constant 0 : index
    %c0_1 = arith.constant 0 : index
    %3 = vector.load %arg11[%c0, %c0_1] : memref<2x4xf32, #tpu.memory_space<vmem>>, vector<2x4xf32>
    %c0_2 = arith.constant 0 : index
    %c0_3 = arith.constant 0 : index
    %c0_4 = arith.constant 0 : index
    %4 = vector.load %arg2[%c0_2, %c0_3, %c0_4] : memref<2x4x128xf32, #tpu.memory_space<vmem>>, vector<2x4x128xf32>
    %cst = arith.constant dense<0.000000e+00> : vector<2x4xf32>
    %5 = vector.multi_reduction <add>, %4, %cst [2] : vector<2x4x128xf32> to vector<2x4xf32>
    %6 = arith.addf %3, %5 : vector<2x4xf32>
    %c0_5 = arith.constant 0 : index
    %c0_6 = arith.constant 0 : index
    %7 = vector.load %arg11[%c0_5, %c0_6] : memref<2x4xf32, #tpu.memory_space<vmem>>, vector<2x4xf32>
    tpu.vector_store %arg11[%c0_5, %c0_6], %6 {strides = array<i32>} : memref<2x4xf32, #tpu.memory_space<vmem>>, vector<2x4xf32>,
    %c1_i32 = arith.constant 1 : i32
    %8 = arith.cmpi eq, %arg1, %c1_i32 : i32
    %9 = arith.extui %8 : i1 to i32
    %c0_i32_7 = arith.constant 0 : i32
    %10 = arith.cmpi ne, %9, %c0_i32_7 : i32
    scf.if %10 {
      %c0_8 = arith.constant 0 : index
      %c0_9 = arith.constant 0 : index
      %11 = vector.load %arg11[%c0_8, %c0_9] : memref<2x4xf32, #tpu.memory_space<vmem>>, vector<2x4xf32>
      %cst_10 = arith.constant 3.906250e-03 : f32
      %12 = vector.broadcast %cst_10 : f32 to vector<2x4xf32>
      %13 = arith.mulf %11, %12 : vector<2x4xf32>
      %c0_11 = arith.constant 0 : index
      %c0_12 = arith.constant 0 : index
      %14 = vector.load %arg3[%c0_11, %c0_12] : memref<4x128xf32, #tpu.memory_space<vmem>>, vector<4x128xf32>
      %cst_13 = arith.constant dense<0.000000e+00> : vector<2x128xf32>
      %15 = tpu.matmul %13, %14, %cst_13 {dimension_numbers = #tpu.dot_dimension_numbers<[1], [0], [0], [1], [0, 0, 1, 1], [], []>} : vector<2x4xf32>, vector<4x128xf32>, vector<2x128xf32> -> vector<2x128xf32>
      %c0_14 = arith.constant 0 : index
      %c0_15 = arith.constant 0 : index
      %16 = vector.load %arg4[%c0_14, %c0_15] : memref<1x128xf32, #tpu.memory_space<vmem>>, vector<1x128xf32>
      %17 = vector.broadcast %16 : vector<1x128xf32> to vector<2x128xf32>
      %18 = arith.addf %15, %17 : vector<2x128xf32>
      %c0_16 = arith.constant 0 : index
      %c0_17 = arith.constant 0 : index
      %19 = vector.load %arg5[%c0_16, %c0_17] : memref<128x128xf32, #tpu.memory_space<vmem>>, vector<128x128xf32>
      %cst_18 = arith.constant dense<0.000000e+00> : vector<2x128xf32>
      %20 = tpu.matmul %18, %19, %cst_18 {dimension_numbers = #tpu.dot_dimension_numbers<[1], [0], [0], [1], [0, 0, 1, 1], [], []>} : vector<2x128xf32>, vector<128x128xf32>, vector<2x128xf32> -> vector<2x128xf32>
      %c0_19 = arith.constant 0 : index
      %c0_20 = arith.constant 0 : index
      %21 = vector.load %arg6[%c0_19, %c0_20] : memref<1x128xf32, #tpu.memory_space<vmem>>, vector<1x128xf32>
      %22 = vector.broadcast %21 : vector<1x128xf32> to vector<2x128xf32>
      %23 = arith.addf %20, %22 : vector<2x128xf32>
      %cst_21 = arith.constant 0.000000e+00 : f32
      %24 = vector.broadcast %cst_21 : f32 to vector<2x128xf32>
      %25 = arith.maximumf %23, %24 : vector<2x128xf32>
      %c0_22 = arith.constant 0 : index
      %c0_23 = arith.constant 0 : index
      %26 = vector.load %arg7[%c0_22, %c0_23] : memref<128x128xf32, #tpu.memory_space<vmem>>, vector<128x128xf32>
      %cst_24 = arith.constant dense<0.000000e+00> : vector<2x128xf32>
      %27 = tpu.matmul %25, %26, %cst_24 {dimension_numbers = #tpu.dot_dimension_numbers<[1], [0], [0], [1], [0, 0, 1, 1], [], []>} : vector<2x128xf32>, vector<128x128xf32>, vector<2x128xf32> -> vector<2x128xf32>
      %c0_25 = arith.constant 0 : index
      %c0_26 = arith.constant 0 : index
      %28 = vector.load %arg8[%c0_25, %c0_26] : memref<1x128xf32, #tpu.memory_space<vmem>>, vector<1x128xf32>
      %29 = vector.broadcast %28 : vector<1x128xf32> to vector<2x128xf32>
      %30 = arith.addf %27, %29 : vector<2x128xf32>
      %c0_27 = arith.constant 0 : index
      %c0_28 = arith.constant 0 : index
      %31 = vector.load %arg9[%c0_27, %c0_28] : memref<2x128xf32, #tpu.memory_space<vmem>>, vector<2x128xf32>
      tpu.vector_store %arg9[%c0_27, %c0_28], %23 {strides = array<i32>} : memref<2x128xf32, #tpu.memory_space<vmem>>, vector<2x128xf32>,
      %c0_29 = arith.constant 0 : index
      %c0_30 = arith.constant 0 : index
      %32 = vector.load %arg10[%c0_29, %c0_30] : memref<2x128xf32, #tpu.memory_space<vmem>>, vector<2x128xf32>
      tpu.vector_store %arg10[%c0_29, %c0_30], %30 {strides = array<i32>} : memref<2x128xf32, #tpu.memory_space<vmem>>, vector<2x128xf32>,
    } else {
    }
    return
  }
  func.func @transform_0(%arg0: i32, %arg1: i32) -> (i32, i32, i32) {
    %c0_i32 = arith.constant 0 : i32
    %c0_i32_0 = arith.constant 0 : i32
    return %arg0, %c0_i32, %arg1 : i32, i32, i32
  }
  func.func @transform_1(%arg0: i32, %arg1: i32) -> (i32, i32) {
    %c0_i32 = arith.constant 0 : i32
    %c0_i32_0 = arith.constant 0 : i32
    %c0_i32_1 = arith.constant 0 : i32
    return %c0_i32, %c0_i32_0 : i32, i32
  }
  func.func @transform_2(%arg0: i32, %arg1: i32) -> (i32, i32) {
    %c0_i32 = arith.constant 0 : i32
    %c0_i32_0 = arith.constant 0 : i32
    %c0_i32_1 = arith.constant 0 : i32
    return %c0_i32, %c0_i32_0 : i32, i32
  }
  func.func @transform_3(%arg0: i32, %arg1: i32) -> (i32, i32) {
    %c0_i32 = arith.constant 0 : i32
    %c0_i32_0 = arith.constant 0 : i32
    %c0_i32_1 = arith.constant 0 : i32
    return %c0_i32, %c0_i32_0 : i32, i32
  }
  func.func @transform_4(%arg0: i32, %arg1: i32) -> (i32, i32) {
    %c0_i32 = arith.constant 0 : i32
    %c0_i32_0 = arith.constant 0 : i32
    %c0_i32_1 = arith.constant 0 : i32
    return %c0_i32, %c0_i32_0 : i32, i32
  }
  func.func @transform_5(%arg0: i32, %arg1: i32) -> (i32, i32) {
    %c0_i32 = arith.constant 0 : i32
    %c0_i32_0 = arith.constant 0 : i32
    %c0_i32_1 = arith.constant 0 : i32
    return %c0_i32, %c0_i32_0 : i32, i32
  }
  func.func @transform_6(%arg0: i32, %arg1: i32) -> (i32, i32) {
    %c0_i32 = arith.constant 0 : i32
    %c0_i32_0 = arith.constant 0 : i32
    %c0_i32_1 = arith.constant 0 : i32
    return %c0_i32, %c0_i32_0 : i32, i32
  }
  func.func @transform_7(%arg0: i32, %arg1: i32) -> (i32, i32) {
    %c0_i32 = arith.constant 0 : i32
    %c0_i32_0 = arith.constant 0 : i32
    return %arg0, %c0_i32 : i32, i32
  }
  func.func @transform_8(%arg0: i32, %arg1: i32) -> (i32, i32) {
    %c0_i32 = arith.constant 0 : i32
    %c0_i32_0 = arith.constant 0 : i32
    return %arg0, %c0_i32 : i32, i32
  }
}

</mosaic_0001>

<bundles_post_ra>
// kernel: tpu_custom_call.1
= control target key start
LH: loop header
LB: loop body
LE: loop exit
PB: predicated region body
PF: predicated region fallthrough
CT: control target
= control target key end

     0   :  { %s1712_s0 = inlined_call_operand.hbm [shape: f32[2,4,256], index: 0, kind: input, shape index: {}]   ;;  %s1713_s1 = inlined_call_operand.hbm [shape: f32[4,128], index: 1, kind: input, shape index: {}]   ;;  %s1714_s2 = inlined_call_operand.vmem [shape: f32[1,128], index: 2, kind: input, shape index: {}]   ;;  %s1715_s3 = inlined_call_operand.hbm [shape: f32[128,128], index: 3, kind: input, shape index: {}]   ;;  %s1716_s4 = inlined_call_operand.vmem [shape: f32[1,128], index: 4, kind: input, shape index: {}]   ;;  %s1717_s5 = inlined_call_operand.hbm [shape: f32[128,128], index: 5, kind: input, shape index: {}]   ;;  %s1718_s6 = inlined_call_operand.vmem [shape: f32[1,128], index: 6, kind: input, shape index: {}]   ;;  %s1719_s7 = inlined_call_operand.hbm [shape: f32[2,128], index: 7, kind: output, shape index: {0}]   ;;  %s1720_s8 = inlined_call_operand.hbm [shape: f32[2,128], index: 8, kind: output, shape index: {1}]  }
   0x1   :  { %1730 = sst [smem:[#allocation20_spill]] %s1713_s1 }
   0x2   :  { %1731 = sst [smem:[#allocation21_spill]] %s1719_s7 }
   0x3   :  { %1732 = sst [smem:[#allocation22_spill]] %s1720_s8 }
   0x4   :  { %14 = vsyncpa [#allocation4], 0 }
   0x5   :  { %16 = vsyncpa [#allocation4 + $0x1], 0 }
   0x6   :  { %17 = vsyncpa [#allocation7], 0 }
   0x7   :  { %18 = vsyncpa [#allocation10], 0 }
   0x8   :  { %19 = vsyncpa [#allocation5], 0 }
   0x9   :  { %20 = vsyncpa [#allocation13], 0  ;;  %s1407_s27 = smov 0   ;;  %s1409_s28 = smov 0  }
   0xa   :  { %s1411_s29 = smov 0   ;;  %s1413_s30 = smov 0  }
   0xb   :  { %s1415_s9 = smov 0   ;;  %s1417_s10 = smov 0  }
   0xc LB: > { %1733 = sst [smem:[#allocation19_spill]] %s1346_s10  ;;  %s1726_s11 = sadd.s32 4294967295, %s1346_s10   ;;  %s1346_s10 = sphi %s1417_s10, %s26_s10   ;;  %s1342_s9 = sphi %s1415_s9, %s1756_s9   ;;  %s1338_s30 = sphi %s1413_s30, %s1755_s30   ;;  %s1334_s29 = sphi %s1411_s29, %s1754_s29   ;;  %s1330_s28 = sphi %s1409_s28, %s1753_s28   ;;  %s1326_s27 = sphi %s1407_s27, %s1752_s27  }
   0xd   : > { %p54_p0 = scmp.ne.s32.totalorder %s1334_s29, %s1330_s28  ;;  %p55_p1 = scmp.eq.s32.totalorder %s1346_s10, 0 }
   0xe   : > { %p60_p2 = scmp.ne.s32.totalorder %s1330_s28, %s1326_s27  ;;  %p1442_p3 = scmp.eq.s32.totalorder %s1726_s11, 0 }
   0xf   : > { %p822_p4 = scmp.ge.s32.totalorder %s1346_s10, 1  ;;  %p56_p5 = por %p55_p1, %p54_p0 }
  0x10   : > { %s1734_s12 = scalar_select %p1442_p3, 1, 0 }
  0x11   : > { %p249_p6 = scmp.lt.s32.totalorder %s1346_s10, 3  ;;  %p1450_p7 = por %p1442_p3, %p60_p2 }
  0x12   : > { %s1348_s15 = smov [#allocation6]   ;;  %p1045_p10 = scmp.lt.s32.totalorder %s1346_s10, 2 }
  0x13   : > { %s1735_s13 = scalar_select %p1450_p7, 1, 0 }
  0x14   : > { %p1454_p8 = pnand %p822_p4, %p249_p6  ;;  %s262_s16 = sshll.u32 %s1348_s15, 4  ;;  %s263_s16 = int_to_ptr.vmem [resolvable:$true] %s262_s16 }
  0x15   : > { %s1349_s18 = smov [#allocation8]   ;;  %p1467_p12 = pnand %p1045_p10, %p56_p5 }
  0x16   : > { %s1736_s14 = scalar_select %p1454_p8, 1, 0 }
  0x17   : > { %p1028_p9 = pneg %p1454_p8  ;;  %s275_s19 = sshll.u32 %s1349_s18, 4  ;;  %s1471_s19 = int_to_ptr.vmem [resolvable:$true] %s275_s19 }
  0x18   : > { %s1738_s20 = scalar_select %p1467_p12, 1, 0 }
  0x19   : > { %p1463_p11 = pnand %p1028_p9, %p1442_p3  ;;  %s1739_s1 = sld [smem:[#allocation20_spill]] }
  0x1b   : > { %p1481_p0 = pneg %p1463_p11 }
  0x1f   : > { %s1114_s23 = scalar_lea.hbm %s1739_s1, 64 }
  0x20   : > { %p1115_p13 = scmp.ne.s32.totalorder %s1739_s1, %s1114_s23  ;;  %p1121_p4 = scmp.lt.u32.totalorder %s1114_s23, %s1739_s1 }
  0x22   : > { %p1117_p1 = pnand %p1481_p0, %p1115_p13 }
  0x24   : > { %p1118_p2 = pneg %p1117_p1 }
  0x26   : > { %p1123_p5 = pnand %p1121_p4, %p1118_p2 }
  0x28   : > { %1126 = shalt.err (!%p1123_p5)
}
  0x29   : > { %s1127_s18 = scalar_lea.vmem %s263_s16, 64  ;;  %p1135_p3 = scmp.lt.s32.totalorder %s263_s16, %s263_s16 }
  0x2a   : > { %p1128_p6 = scmp.ne.s32.totalorder %s263_s16, %s1127_s18  ;;  %p1136_p7 = scmp.lt.s32.totalorder %s1127_s18, %s1127_s18 }
  0x2c   : > { %p1130_p9 = pnand %p1128_p6, %p1481_p0  ;;  %p1137_p8 = por %p1136_p7, %p1135_p3 }
  0x2e   : > { %p1131_p10 = pneg %p1130_p9 }
  0x30   : > { %p1138_p12 = pnand %p1137_p8, %p1131_p10 }
  0x32   : > { %1141 = shalt.err (!%p1138_p12)
}
  0x33   : > { %1031 = dma.hbm_to_vmem [thread:$0]  (!%p1463_p11), %s1739_s1, 64, %s263_s16, [#allocation7]  }
  0x34   : > { %s1142_s25 = scalar_lea.hbm %s1715_s3, 2048 }
  0x35   : > { %p1143_p13 = scmp.ne.s32.totalorder %s1715_s3, %s1142_s25  ;;  %p1149_p7 = scmp.lt.u32.totalorder %s1142_s25, %s1715_s3 }
  0x37   : > { %p1145_p1 = pnand %p1143_p13, %p1481_p0 }
  0x39   : > { %p1146_p3 = pneg %p1145_p1 }
  0x3b   : > { %p1151_p8 = pnand %p1149_p7, %p1146_p3 }
  0x3d   : > { %1154 = shalt.err (!%p1151_p8)
}
  0x3e   : > { %s1155_s16 = scalar_lea.vmem %s1471_s19, 2048  ;;  %p1163_p5 = scmp.lt.s32.totalorder %s1471_s19, %s1471_s19 }
  0x3f   : > { %p1156_p12 = scmp.ne.s32.totalorder %s1471_s19, %s1155_s16  ;;  %p1164_p6 = scmp.lt.s32.totalorder %s1155_s16, %s1155_s16 }
  0x41   : > { %p1158_p2 = pnand %p1156_p12, %p1481_p0  ;;  %p1165_p9 = por %p1164_p6, %p1163_p5 }
  0x43   : > { %p1159_p4 = pneg %p1158_p2 }
  0x45   : > { %p1166_p10 = pnand %p1165_p9, %p1159_p4 }
  0x47   : > { %1169 = shalt.err (!%p1166_p10)
}
  0x48   : > { %s1350_s21 = smov 128   ;;  %s1351_s11 = smov 8  }
  0x49   : > { %1034 = dma.hbm_to_vmem [thread:$0]  (!%p1463_p11), %s1715_s3, 2048, %s1471_s19, [#allocation7], %s1350_s21, %s1350_s21, %s1351_s11  }
  0x4a   : > { %s1352_s24 = smov [#allocation9]   ;;  %s35_s27 = sadd.s32 1, %s1342_s9 }
  0x4b   : > { %s291_s25 = sshll.u32 %s1352_s24, 4  ;;  %s1170_s16 = scalar_lea.hbm %s1717_s5, 2048  ;;  %s292_s25 = int_to_ptr.vmem [resolvable:$true] %s291_s25 }
  0x4c   : > { %p1171_p13 = scmp.ne.s32.totalorder %s1717_s5, %s1170_s16  ;;  %p1177_p7 = scmp.lt.u32.totalorder %s1170_s16, %s1717_s5 }
  0x4e   : > { %p1173_p1 = pnand %p1171_p13, %p1481_p0 }
  0x50   : > { %p1174_p3 = pneg %p1173_p1 }
  0x52   : > { %p1179_p8 = pnand %p1177_p7, %p1174_p3 }
  0x54   : > { %1182 = shalt.err (!%p1179_p8)
}
  0x55   : > { %s1183_s19 = scalar_lea.vmem %s292_s25, 2048  ;;  %p1191_p5 = scmp.lt.s32.totalorder %s292_s25, %s292_s25 }
  0x56   : > { %p1184_p12 = scmp.ne.s32.totalorder %s292_s25, %s1183_s19  ;;  %p1192_p6 = scmp.lt.s32.totalorder %s1183_s19, %s1183_s19 }
  0x58   : > { %p1186_p2 = pnand %p1184_p12, %p1481_p0  ;;  %p1193_p9 = por %p1192_p6, %p1191_p5 }
  0x5a   : > { %p1187_p4 = pneg %p1186_p2 }
  0x5c   : > { %p1194_p10 = pnand %p1193_p9, %p1187_p4 }
  0x5e   : > { %1197 = shalt.err (!%p1194_p10)
}
  0x5f   : > { %1037 = dma.hbm_to_vmem [thread:$0]  (!%p1463_p11), %s1717_s5, 2048, %s292_s25, [#allocation10], %s1350_s21, %s1350_s21, %s1351_s11  }
  0x60   : > { %p36_p0 = scmp.ge.s32.totalorder %s35_s27, 2  ;;  %s47_s8 = sadd.s32 1, %s1334_s29 }
  0x61   : > { %s308_s10 = sand.u32 1, %s1334_s29   ;;  %s828_s26 = sshll.u32 %s1342_s9, 6 }
  0x62   : > { %s1758_s27 = smov (%p36_p0, %s35_s27), 0  ;;  %s827_s17 = sshll.u32 %s308_s10, 3 }
  0x63   : > { %s43_s22 = ssub.s32 %s1342_s9, %s1758_s27  ;;  %s1553_s15 = scalar_lea.hbm %s1712_s0, %s828_s26 }
  0x64   : > { %p45_p13 = scmp.eq.s32.totalorder %s43_s22, 0  ;;  %s312_s11 = scalar_lea.vmem [#allocation3], %s827_s17 }
  0x65   : > { %s321_s25 = sshll.u32 %s312_s11, 4  ;;  %s1560_s16 = scalar_lea.sflag [#allocation4], %s308_s10  ;;  %s1558_s25 = int_to_ptr.vmem [resolvable:$true] %s321_s25 }
  0x66   : > { %s1556_s18 = scalar_select %p45_p13, %s1334_s29, %s47_s8  }
  0x67   : > { %s1198_s19 = scalar_lea.hbm %s1553_s15, 128  ;;  %p1741_p1 = scmp.ne.s32.totalorder %s1738_s20, 0 }
  0x68   : > { %p1199_p11 = scmp.ne.s32.totalorder %s1553_s15, %s1198_s19  ;;  %s1203_s26 = scalar_lea.hbm %s1712_s0, 256 }
  0x69   : > { %p1200_p3 = pneg %p1741_p1  ;;  %p1204_p12 = scmp.lt.u32.totalorder %s1553_s15, %s1712_s0 }
  0x6a   : > { %p1205_p2 = scmp.lt.u32.totalorder %s1203_s26, %s1198_s19  ;;  %p1207_p5 = scmp.lt.u32.totalorder %s1198_s19, %s1553_s15 }
  0x6b   : > { %p1201_p7 = pnand %p1200_p3, %p1199_p11 }
  0x6c   : > { %p1206_p4 = por %p1205_p2, %p1204_p12 }
  0x6d   : > { %p1202_p8 = pneg %p1201_p7 }
  0x6e   : > { %p1208_p6 = por %p1207_p5, %p1206_p4 }
  0x70   : > { %p1209_p9 = pnand %p1208_p6, %p1202_p8 }
  0x72   : > { %1212 = shalt.err (!%p1209_p9)
}
  0x73   : > { %s1213_s8 = scalar_lea.vmem %s1558_s25, 128  ;;  %s1353_s10 = smov [#allocation3]  }
  0x74   : > { %p1214_p10 = scmp.ne.s32.totalorder %s1558_s25, %s1213_s8  ;;  %s1218_s23 = sshll.u32 %s1353_s10, 4  ;;  %s1219_s23 = int_to_ptr.vmem [resolvable:$false] %s1218_s23 }
  0x75   : > { %s1220_s24 = scalar_lea.vmem %s1219_s23, 256  ;;  %p1221_p11 = scmp.lt.s32.totalorder %s1558_s25, %s1219_s23 }
  0x76   : > { %p1216_p0 = pnand %p1214_p10, %p1200_p3  ;;  %p1222_p7 = scmp.lt.s32.totalorder %s1220_s24, %s1213_s8 }
  0x78   : > { %p1217_p13 = pneg %p1216_p0  ;;  %p1223_p12 = por %p1222_p7, %p1221_p11 }
  0x7a   : > { %p1224_p2 = pnand %p1223_p12, %p1217_p13 }
  0x7c   : > { %1227 = shalt.err (!%p1224_p2)
}
  0x7d   : > { %s1354_s11 = smov 64   ;;  %s1355_s19 = smov 4  }
  0x7e   : > { %1041 = dma.hbm_to_vmem [thread:$0]  (!%p1741_p1), %s1553_s15, 128, %s1558_s25, %s1560_s16, %s1350_s21, %s1354_s11, %s1355_s19  }
  0x7f   : > { %p1742_p3 = scmp.ne.s32.totalorder %s1736_s14, 0 }
  0x80   : > { %s335_s1 = sand.u32 (!%p1742_p3), 1, %s1330_s28   ;;  %p1743_p8 = scmp.ne.s32.totalorder (!%p1742_p3), %s1735_s13, 0 }
  0x81   : > { %333 = sbr.rel (%p1742_p3) target bundleno = 1023 (0x3ff), region = 48  ;;  %s830_s7 = sshll.u32 (!%p1742_p3), %s335_s1, 3 }
  0x82   : > { %s336_s26 = scalar_lea.sflag (!%p1742_p3), [#allocation4], %s335_s1  ;;  %s339_s17 = scalar_lea.vmem (!%p1742_p3), [#allocation3], %s830_s7 }
  0x88   : > { %1305 = dma.done.wait (%p1743_p8), %s336_s26, 128  }
  0x89   : > { %1307 = vsyncadd (%p1743_p8), %s336_s26, 4294967168  ;;  %p1744_p4 = scmp.ne.s32.totalorder %s1734_s12, 0 }
  0x8b   : > { %1309 = dma.done.wait (%p1744_p4), [#allocation7], 2112  }
  0x8c   : > { %1311 = vsyncadd (%p1744_p4), [#allocation7], 4294965184 }
  0x8d   : > { %1313 = dma.done.wait (%p1744_p4), [#allocation10], 2048  }
  0x8e   : > { %1315 = vsyncadd (%p1744_p4), [#allocation10], 4294965248  ;;  %p834_p1 = scmp.ne.s32.totalorder %s1338_s30, 0 }
  0x8f   : > { %vm384_vm0 = vcmask (!%p834_p1), 25600   ;;  %v1356_v0 = vmov (!%p834_p1), 0.0  }
  0x90   : > { %383 = sbr.rel (%p834_p1) target bundleno = 151 (0x97), region = 68  ;;  %385 = vst.msk [vmem:[#allocation2] sm:$0x3] (!%p834_p1), %vm384_vm0, %v1356_v0 }
  0x97 PF: > { %v387_v1 = vld [vmem:[%s339_s17] sm:$0xf]  ;;  %vm389_vm1 = vcmask 1043456   ;;  %v388_v2 = vld [vmem:[%s339_s17 + $0x4] sm:$0xf]  ;;  %v398_v5 = vlaneseq  ;;  %vm408_vm2 = vcmask 1041409  }
  0x98   : > { %v390_v3 = vsel %vm389_vm1, %v387_v1, 0.0  ;;  %v393_v4 = vsel %vm389_vm1, %v388_v2, 0.0  ;;  %v386_v12 = vld [vmem:[#allocation2] sm:$0x3]  ;;  %vm412_vm3 = vcmask 25600   ;;  %p835_p5 = scmp.ne.s32.totalorder %s1338_s30, 1 }
  0x99   : > { %391 = vadd.xlane.f32.xlu0 %v390_v3  ;;  %v399_v6 = vand.u32 127, %v398_v5  ;;  %v401_v7 = vshrl.u32 %v398_v5, 7  ;;  %v420_v16 = vld [vmem:[#allocation6] sm:$0xf] (!%p835_p5)  ;;  %v1357_v18 = vmov (!%p835_p5), 0.0   ;;  %vm1358_vm4 = vmmov (!%p835_p5), 0  }
  0x9a   : > { %883 = vmatprep.subr.mxu0 (!%p835_p5), %v1357_v18  ;;  %885 = vmatprep.mubr.msk.f32.mxu0 (!%p835_p5), %vm1358_vm4, %v1357_v18  ;;  %vm428_vm5 = vcmask (!%p835_p5), 31744   ;;  %v505_v20 = vld [vmem:[#allocation8] sm:$0xff] (!%p835_p5)  ;;  %v506_v21 = vld [vmem:[#allocation8 + $0x8] sm:$0xff] (!%p835_p5)  ;;  %v507_v22 = vld [vmem:[#allocation8 + $0x10] sm:$0xff] (!%p835_p5)  ;;  %v1359_v23 = vmov (!%p835_p5), 0.0|0.0  }
  0x9b   : > { %v402_v9 = vsub.s32 %v399_v6, %v401_v7  ;;  %884 = vmatpush3.msk.msra.mxu0 (!%p835_p5), %vm389_vm1, %v420_v16  ;;  %958 = vmatprep.subr.bf16.mxu1 (!%p835_p5), %v1359_v23  ;;  %v959_v24 = vpack.c.bf16 (!%p835_p5), %v506_v21, %v505_v20  ;;  %v508_v25 = vld [vmem:[#allocation8 + $0x18] sm:$0xff] (!%p835_p5)  ;;  %v509_v27 = vld [vmem:[#allocation8 + $0x20] sm:$0xff] (!%p835_p5)  ;;  %v510_v28 = vld [vmem:[#allocation8 + $0x28] sm:$0xff] (!%p835_p5) }
  0x9c   : > { %920 = vmatprep.mubr.msk.f32.mxu1 (!%p835_p5), %vm1358_vm4, %v1357_v18  ;;  %v962_v26 = vpack.c.bf16 (!%p835_p5), %v508_v25, %v507_v22  ;;  %982 = vmatprep.subr.bf16.mxu0 (!%p835_p5), %v1359_v23  ;;  %v965_v29 = vpack.c.bf16 (!%p835_p5), %v510_v28, %v509_v27  ;;  %v511_v30 = vld [vmem:[#allocation8 + $0x30] sm:$0xff] (!%p835_p5)  ;;  %v512_v31 = vld [vmem:[#allocation8 + $0x38] sm:$0xff] (!%p835_p5)  ;;  %v513_v33 = vld [vmem:[#allocation8 + $0x40] sm:$0xff] (!%p835_p5) }
  0x9d   : > { %394 = vadd.xlane.f32.xlu0 %v393_v4  ;;  %960 = vmatpush3.bf16.msra.mxu1 (!%p835_p5), %v959_v24  ;;  %v968_v32 = vpack.c.bf16 (!%p835_p5), %v512_v31, %v511_v30  ;;  %v514_v34 = vld [vmem:[#allocation8 + $0x48] sm:$0xff] (!%p835_p5)  ;;  %v515_v36 = vld [vmem:[#allocation8 + $0x50] sm:$0xff] (!%p835_p5)  ;;  %v516_v37 = vld [vmem:[#allocation8 + $0x58] sm:$0xff] (!%p835_p5) }
  0x9e   : > { %961 = vmatprep.subr.bf16.mxu1 (!%p835_p5), %v1359_v23  ;;  %v971_v35 = vpack.c.bf16 (!%p835_p5), %v514_v34, %v513_v33  ;;  %v974_v38 = vpack.c.bf16 (!%p835_p5), %v516_v37, %v515_v36  ;;  %v517_v39 = vld [vmem:[#allocation8 + $0x60] sm:$0xff] (!%p835_p5)  ;;  %v518_v40 = vld [vmem:[#allocation8 + $0x68] sm:$0xff] (!%p835_p5)  ;;  %v519_v42 = vld [vmem:[#allocation8 + $0x70] sm:$0xff] (!%p835_p5) }
  0x9f   : > { %v977_v41 = vpack.c.bf16 (!%p835_p5), %v518_v40, %v517_v39  ;;  %v520_v43 = vld [vmem:[#allocation8 + $0x78] sm:$0xff] (!%p835_p5)  ;;  %v599_v45 = vld [vmem:[#allocation9] sm:$0xff] (!%p835_p5)  ;;  %v600_v46 = vld [vmem:[#allocation9 + $0x8] sm:$0xff] (!%p835_p5) }
  0xa0   : > { %v980_v44 = vpack.c.bf16 (!%p835_p5), %v520_v43, %v519_v42  ;;  %v601_v47 = vld [vmem:[#allocation9 + $0x10] sm:$0xff] (!%p835_p5)  ;;  %v983_v48 = vpack.c.bf16 (!%p835_p5), %v600_v46, %v599_v45  ;;  %v602_v49 = vld [vmem:[#allocation9 + $0x18] sm:$0xff] (!%p835_p5)  ;;  %v603_v51 = vld [vmem:[#allocation9 + $0x20] sm:$0xff] (!%p835_p5) }
  0xa1   : > { %963 = vmatpush3.bf16.msra.mxu1 (!%p835_p5), %v962_v26  ;;  %v986_v50 = vpack.c.bf16 (!%p835_p5), %v602_v49, %v601_v47  ;;  %v604_v52 = vld [vmem:[#allocation9 + $0x28] sm:$0xff] (!%p835_p5)  ;;  %v605_v54 = vld [vmem:[#allocation9 + $0x30] sm:$0xff] (!%p835_p5)  ;;  %v606_v55 = vld [vmem:[#allocation9 + $0x38] sm:$0xff] (!%p835_p5) }
  0xa2   : > { %964 = vmatprep.subr.bf16.mxu1 (!%p835_p5), %v1359_v23  ;;  %v989_v53 = vpack.c.bf16 (!%p835_p5), %v604_v52, %v603_v51  ;;  %v992_v56 = vpack.c.bf16 (!%p835_p5), %v606_v55, %v605_v54  ;;  %v607_v57 = vld [vmem:[#allocation9 + $0x40] sm:$0xff] (!%p835_p5)  ;;  %v608_v58 = vld [vmem:[#allocation9 + $0x48] sm:$0xff] (!%p835_p5)  ;;  %v609_v60 = vld [vmem:[#allocation9 + $0x50] sm:$0xff] (!%p835_p5) }
  0xa3   : > { %v995_v59 = vpack.c.bf16 (!%p835_p5), %v608_v58, %v607_v57  ;;  %v610_v61 = vld [vmem:[#allocation9 + $0x58] sm:$0xff] (!%p835_p5)  ;;  %v611_v63 = vld [vmem:[#allocation9 + $0x60] sm:$0xff] (!%p835_p5)  ;;  %v612_v0 = vld [vmem:[#allocation9 + $0x68] sm:$0xff] (!%p835_p5) }
  0xa4   : > { %v998_v62 = vpack.c.bf16 (!%p835_p5), %v610_v61, %v609_v60  ;;  %v1001_v1 = vpack.c.bf16 (!%p835_p5), %v612_v0, %v611_v63  ;;  %v836_v2 = vld [vmem:[%s1714_s2] ss:$0 sm:$0xff] (!%p835_p5)  ;;  %v613_v6 = vld [vmem:[#allocation9 + $0x70] sm:$0xff] (!%p835_p5)  ;;  %v614_v7 = vld [vmem:[#allocation9 + $0x78] sm:$0xff] (!%p835_p5) }
  0xa5   : > { %966 = vmatpush3.bf16.msra.mxu1 (!%p835_p5), %v965_v29 }
  0xa6   : > { %967 = vmatprep.subr.bf16.mxu1 (!%p835_p5), %v1359_v23 }
  0xa9   : > { %969 = vmatpush3.bf16.msra.mxu1 (!%p835_p5), %v968_v32 }
  0xaa   : > { %970 = vmatprep.subr.bf16.mxu1 (!%p835_p5), %v1359_v23 }
  0xad   : > { %972 = vmatpush3.bf16.msra.mxu1 (!%p835_p5), %v971_v35 }
  0xae   : > { %973 = vmatprep.subr.bf16.mxu1 (!%p835_p5), %v1359_v23 }
  0xb1   : > { %975 = vmatpush3.bf16.msra.mxu1 (!%p835_p5), %v974_v38 }
  0xb2   : > { %976 = vmatprep.subr.bf16.mxu1 (!%p835_p5), %v1359_v23 }
  0xb5   : > { %978 = vmatpush3.bf16.msra.mxu1 (!%p835_p5), %v977_v41 }
  0xb6   : > { %979 = vmatprep.subr.bf16.mxu1 (!%p835_p5), %v1359_v23 }
  0xb9   : > { %981 = vmatpush3.bf16.msra.mxu1 (!%p835_p5), %v980_v44 }
 0x126   : > { %v392_v8 = vpop.xlane.xlu0 %391 }
 0x127   : > { %v403_v11 = vrot.slane %v392_v8, %v402_v9  ;;  %v1004_v8 = vpack.c.bf16 (!%p835_p5), %v614_v7, %v613_v6 }
 0x12a   : > { %v395_v10 = vpop.xlane.xlu0 %394  ;;  %417 = sbr.rel (%p835_p5) target bundleno = 959 (0x3bf), region = 72 }
 0x12b   : > { %v407_v13 = vrot.slane %v395_v10, %v402_v9  ;;  %v839_v9 = vld [vmem:[%s1716_s4] ss:$0 sm:$0xff] (!%p835_p5) }
 0x12d   : > { %v409_v14 = vsel %vm408_vm2, %v407_v13, %v403_v11 }
 0x12e   : > { %v411_v15 = vadd.f32 %v409_v14, %v386_v12  ;;  %v840_v14 = vld [vmem:[%s1718_s6] ss:$0 sm:$0xff] (!%p835_p5) }
 0x130   : > { %413 = vst.msk [vmem:[#allocation2] sm:$0x3] %vm412_vm3, %v411_v15 }
 0x137   : > { %v418_v17 = vld [vmem:[#allocation2] sm:$0x3] }
 0x138   : > { %v419_v19 = vmul.f32 0.00390625, %v418_v17 }
 0x13a   : > { %886 = vmatmul.mubr.msk.f32.vlgmr.msra.gmra.mrb[0].mxu0 %vm428_vm5, %v419_v19 }
 0x13b   : > { %955 = vmatprep.mubr.msk.f32.mxu0 %vm1358_vm4, %v1357_v18  ;;  %984 = vmatpush3.bf16.msra.mxu0 %v983_v48 }
 0x13c   : > { %985 = vmatprep.subr.bf16.mxu0 %v1359_v23 }
 0x13f   : > { %987 = vmatpush3.bf16.msra.mxu0 %v986_v50 }
 0x140   : > { %988 = vmatprep.subr.bf16.mxu0 %v1359_v23 }
 0x143   : > { %990 = vmatpush3.bf16.msra.mxu0 %v989_v53 }
 0x144   : > { %991 = vmatprep.subr.bf16.mxu0 %v1359_v23 }
 0x147   : > { %993 = vmatpush3.bf16.msra.mxu0 %v992_v56 }
 0x148   : > { %994 = vmatprep.subr.bf16.mxu0 %v1359_v23 }
 0x14b   : > { %996 = vmatpush3.bf16.msra.mxu0 %v995_v59 }
 0x14c   : > { %997 = vmatprep.subr.bf16.mxu0 %v1359_v23 }
 0x14f   : > { %999 = vmatpush3.bf16.msra.mxu0 %v998_v62 }
 0x150   : > { %1000 = vmatprep.subr.bf16.mxu0 %v1359_v23 }
 0x153   : > { %1002 = vmatpush3.bf16.msra.mxu0 %v1001_v1 }
 0x154   : > { %1003 = vmatprep.subr.bf16.mxu0 %v1359_v23 }
 0x157   : > { %1005 = vmatpush3.bf16.msra.mxu0 %v1004_v8 }
 0x20d   : > { %v501_v3 = vpop.f32.mrb[0].mxu0 }
 0x20e   : > { %v502_v4 = vadd.f32 %v836_v2, %v501_v3  ;;  %v887_v5 = vpop.f32.mrb[1].mxu0 }
 0x210   : > { %921 = vmatmul.mubr.f32.vlgmr.msra.gmra.mrb[0].mxu1 %v502_v4 }
 0x2e3   : > { %v594_v10 = vpop.f32.mrb[0].mxu1 }
 0x2e4   : > { %v595_v11 = vadd.f32 %v839_v9, %v594_v10  ;;  %v922_v12 = vpop.f32.mrb[1].mxu1 }
 0x2e6   : > { %v598_v13 = vmax.f32 %v595_v11, 0.0  ;;  %692 = vst [vmem:[#allocation11] sm:$0x3] %v595_v11 }
 0x2e8   : > { %956 = vmatmul.mubr.f32.vlgmr.msra.gmra.mrb[2].mxu0 %v598_v13 }
 0x3bb   : > { %v688_v15 = vpop.f32.mrb[2].mxu0 }
 0x3bc   : > { %v689_v16 = vadd.f32 %v840_v14, %v688_v15  ;;  %v957_v17 = vpop.f32.mrb[3].mxu0 }
 0x3be   : > { %693 = vst [vmem:[#allocation12] sm:$0x3] %v689_v16 }
 0x3bf PF: > { %s1745_s15 = sld [smem:[#allocation19_spill]]  ;;  %s1360_s22 = smov [#allocation11]  }
 0x3c0   : > { %s703_s8 = sshll.u32 %s1360_s22, 4  ;;  %s1361_s10 = smov [#allocation12]   ;;  %s704_s8 = int_to_ptr.vmem [resolvable:$true] %s703_s8 }
 0x3c1   : > { %s716_s23 = sshll.u32 %s1361_s10, 4  ;;  %s1228_s24 = scalar_lea.vmem %s704_s8, 32  ;;  %s1643_s23 = int_to_ptr.vmem [resolvable:$true] %s716_s23 }
 0x3c2   : > { %p1229_p9 = scmp.ne.s32.totalorder %s704_s8, %s1228_s24  ;;  %p1235_p13 = scmp.lt.s32.totalorder %s704_s8, %s704_s8 }
 0x3c3   : > { %p1236_p11 = scmp.lt.s32.totalorder %s1228_s24, %s1228_s24 }
 0x3c5   : > { %s1746_s25 = sadd.s32 4294967295, %s1745_s15   ;;  %p1237_p7 = por %p1236_p11, %p1235_p13 }
 0x3c6   : > { %p1639_p6 = scmp.eq.s32.totalorder %s1746_s25, 1 }
 0x3c8   : > { %p1230_p10 = pnand %p1229_p9, %p1639_p6 }
 0x3ca   : > { %p1231_p0 = pneg %p1230_p10 }
 0x3cc   : > { %p1238_p12 = pnand %p1237_p7, %p1231_p0 }
 0x3ce   : > { %1241 = shalt.err (!%p1238_p12)
}
 0x3cf   : > { %s1748_s1 = sld [smem:[#allocation21_spill]] }
 0x3d5   : > { %s1242_s7 = scalar_lea.hbm %s1748_s1, 32 }
 0x3d6   : > { %p1243_p2 = scmp.ne.s32.totalorder %s1748_s1, %s1242_s7  ;;  %p1248_p4 = scmp.lt.u32.totalorder %s1242_s7, %s1748_s1 }
 0x3d8   : > { %p1244_p3 = pnand %p1243_p2, %p1639_p6 }
 0x3da   : > { %p1245_p8 = pneg %p1244_p3 }
 0x3dc   : > { %p1250_p1 = pnand %p1248_p4, %p1245_p8 }
 0x3de   : > { %1253 = shalt.err (!%p1250_p1)
}
 0x3df   : > { %1021 = dma.vmem_to_hbm [thread:$0]  (%p1639_p6), %s704_s8, 32, %s1748_s1, [#allocation5]  }
 0x3e0   : > { %s1254_s20 = scalar_lea.vmem %s1643_s23, 32  ;;  %p1261_p0 = scmp.lt.s32.totalorder %s1643_s23, %s1643_s23 }
 0x3e1   : > { %p1255_p5 = scmp.ne.s32.totalorder %s1643_s23, %s1254_s20  ;;  %p1262_p13 = scmp.lt.s32.totalorder %s1254_s20, %s1254_s20 }
 0x3e3   : > { %p1256_p9 = pnand %p1255_p5, %p1639_p6  ;;  %p1263_p11 = por %p1262_p13, %p1261_p0 }
 0x3e5   : > { %p1257_p10 = pneg %p1256_p9 }
 0x3e7   : > { %p1264_p7 = pnand %p1263_p11, %p1257_p10 }
 0x3e9   : > { %1267 = shalt.err (!%p1264_p7)
}
 0x3ea   : > { %s1749_s25 = sld [smem:[#allocation22_spill]] }
 0x3f0   : > { %s1268_s22 = scalar_lea.hbm %s1749_s25, 32 }
 0x3f1   : > { %p1269_p12 = scmp.ne.s32.totalorder %s1749_s25, %s1268_s22  ;;  %p1274_p8 = scmp.lt.u32.totalorder %s1268_s22, %s1749_s25 }
 0x3f3   : > { %p1270_p2 = pnand %p1269_p12, %p1639_p6 }
 0x3f5   : > { %p1271_p3 = pneg %p1270_p2 }
 0x3f7   : > { %p1276_p4 = pnand %p1274_p8, %p1271_p3 }
 0x3f9   : > { %1279 = shalt.err (!%p1276_p4)
}
 0x3fa   : > { %1023 = dma.vmem_to_hbm [thread:$0]  (%p1639_p6), %s1643_s23, 32, %s1749_s25, [#allocation13]  }
 0x3fb   : > { %1317 = dma.done.wait (%p1639_p6), [#allocation5], 32  }
 0x3fc   : > { %1319 = vsyncadd (%p1639_p6), [#allocation5], 4294967264 }
 0x3fd   : > { %1321 = dma.done.wait (%p1639_p6), [#allocation13], 32  }
 0x3fe   : > { %1323 = vsyncadd (%p1639_p6), [#allocation13], 4294967264 }
 0x3ff PF: > { %s1750_s26 = sld [smem:[#allocation19_spill]]  ;;  %s1751_s23 = smov %s1758_s27 }
 0x400   : > { %s1752_s27 = smov %s1330_s28  ;;  %s1753_s28 = smov %s1334_s29 }
 0x401   : > { %s1754_s29 = smov %s1556_s18  ;;  %s1755_s30 = smov %s1342_s9 }
 0x402   : > { %s1756_s9 = smov %s1751_s23 }
 0x405   : > { %s26_s10 = sadd.s32 1, %s1750_s26  }
 0x406   : > { %p23_p1 = scmp.ge.s32.totalorder %s26_s10, 4  }
 0x408   :  { %25 = sbr.rel (!%p23_p1) target bundleno = 12 (0xc), region = 115 }
 0x40f   :  { %733 = vsyncpa [#allocation4], 1 }
 0x410   :  { %735 = vsyncpa [#allocation4 + $0x1], 1 }
 0x411   :  { %736 = vsyncpa [#allocation7], 1 }
 0x412   :  { %737 = vsyncpa [#allocation10], 1 }
 0x413   :  { %738 = vsyncpa [#allocation5], 1 }
 0x414   :  { %740 = vsyncpa [#allocation5 + $0x1], 1 }
 0x415   :  { %741 = vsyncpa [#allocation13], 1 }

</bundles_post_ra>
